<compile_context>
chip_gen: v7x
topology: tpu7x:2x2x1
jax: 0.10.0
libtpu: 0.0.40
codegen_flags: <defaults>
</compile_context>

<pallas_src>
import functools

import jax
import jax.numpy as jnp
from jax.experimental import pallas as pl
from jax.experimental.pallas import tpu as pltpu


def _round_up(x, m):
    return ((x + m - 1) // m) * m


def _make_kernel(B, nc, K, n_real, tile_n, need_mask, eps):
    eps2 = float(eps) * float(eps)

    def kernel(tri_ref, x1_ref, x2_ref, out_ref,
               dot_acc, n1_acc, n2_acc, carry1, carry2):
        pid = pl.program_id(0)

        @pl.when(pid == 0)
        def _init():
            dot_acc[...] = jnp.zeros_like(dot_acc)
            n1_acc[...] = jnp.zeros_like(n1_acc)
            n2_acc[...] = jnp.zeros_like(n2_acc)
            carry1[...] = jnp.zeros_like(carry1)
            carry2[...] = jnp.zeros_like(carry2)

        tri = tri_ref[...]                          # (K, K) f32, tri[j, k] = (j <= k)
        x1 = x1_ref[...].astype(jnp.float32)        # (B, nc, K)
        x2 = x2_ref[...].astype(jnp.float32)

        # Strict selector for the exclusive prefix over chunks within this tile.
        rr = jax.lax.broadcasted_iota(jnp.int32, (nc, nc), 0)
        cc = jax.lax.broadcasted_iota(jnp.int32, (nc, nc), 1)
        excl = (cc < rr).astype(jnp.float32)        # excl[j, i] = 1 if i < j

        def tile_cumsum(x, carry_ref):
            # Within-chunk inclusive cumsum on the MXU: (B*nc, K) @ (K, K).
            local = jnp.dot(x.reshape(B * nc, K), tri,
                            preferred_element_type=jnp.float32)
            local = local.reshape(B, nc, K)
            # Per-chunk totals and exclusive prefix across chunks in this tile.
            chunk_tot = jnp.sum(x, axis=-1)                          # (B, nc)
            ex = jnp.sum(excl[None, :, :] * chunk_tot[:, None, :],
                         axis=-1)                                    # (B, nc)
            offset = carry_ref[...] + ex                             # (B, nc)
            full = local + offset[:, :, None]                        # (B, nc, K)
            # Carry the total of this tile into the next grid step.
            carry_ref[...] = carry_ref[...] + jnp.sum(chunk_tot, axis=-1,
                                                      keepdims=True)
            return full

        c1 = tile_cumsum(x1, carry1)
        c2 = tile_cumsum(x2, carry2)

        if need_mask:
            # Zero out padded tail positions (padding only affects the reductions;
            # carries are already exact because padded inputs are zero).
            pos = (pid * tile_n
                   + jax.lax.broadcasted_iota(jnp.int32, (nc, K), 0) * K
                   + jax.lax.broadcasted_iota(jnp.int32, (nc, K), 1))
            m = (pos < n_real).astype(jnp.float32)[None, :, :]
            c1 = c1 * m
            c2 = c2 * m

        dot_acc[...] += jnp.sum(jnp.sum(c1 * c2, axis=-1), axis=-1, keepdims=True)
        n1_acc[...] += jnp.sum(jnp.sum(c1 * c1, axis=-1), axis=-1, keepdims=True)
        n2_acc[...] += jnp.sum(jnp.sum(c2 * c2, axis=-1), axis=-1, keepdims=True)

        @pl.when(pid == pl.num_programs(0) - 1)
        def _finalize():
            # cos = dot / (max(||c1||, eps) * max(||c2||, eps)), via EUP rsqrt.
            inv1 = jax.lax.rsqrt(jnp.maximum(n1_acc[...], jnp.float32(eps2)))
            inv2 = jax.lax.rsqrt(jnp.maximum(n2_acc[...], jnp.float32(eps2)))
            cos = dot_acc[...] * inv1 * inv2                         # (B, 1)
            out_ref[...] = jnp.mean(jnp.abs(cos), keepdims=True)     # (1, 1)

    return kernel


@functools.partial(jax.jit, static_argnames=("chunk", "max_chunks_per_tile"))
def cos_flattened_loss(x1, x2, *, chunk=128, max_chunks_per_tile=64):
    """Pallas implementation of CosFlattenedLoss.forward. Returns a scalar."""
    b = x1.shape[0]
    x1_flat = x1.reshape(b, -1)         # native dtype; cast happens in-kernel
    x2_flat = x2.reshape(b, -1)
    n = x1_flat.shape[-1]

    K = int(chunk)                      # chunk width (128 matches v5e MXU; fine on v6e/v7x)
    max_nc = _round_up(int(max_chunks_per_tile), 8)
    total_chunks = -(-n // K)
    nc = min(_round_up(total_chunks, 8), max_nc)   # chunks per grid step (multiple of 8)
    c_pad = _round_up(total_chunks, nc)
    n_pad = c_pad * K
    tile_n = nc * K
    num_tiles = c_pad // nc
    need_mask = (n_pad != n)

    if need_mask:
        pad = n_pad - n
        x1_flat = jnp.pad(x1_flat, ((0, 0), (0, pad)))
        x2_flat = jnp.pad(x2_flat, ((0, 0), (0, pad)))
    x1_c = x1_flat.reshape(b, c_pad, K)             # row-major view, free in XLA
    x2_c = x2_flat.reshape(b, c_pad, K)

    # K x K inclusive upper-triangular matrix, built once, resident in VMEM.
    tri = (jnp.arange(K)[:, None] <= jnp.arange(K)[None, :]).astype(jnp.float32)

    kernel = _make_kernel(B=b, nc=nc, K=K, n_real=n, tile_n=tile_n,
                          need_mask=need_mask, eps=1e-8)

    grid_spec = pltpu.PrefetchScalarGridSpec(
        num_scalar_prefetch=0,
        grid=(num_tiles,),
        in_specs=[
            pl.BlockSpec((K, K), lambda i: (0, 0)),          # tri: same block -> resident
            pl.BlockSpec((b, nc, K), lambda i: (0, i, 0)),   # x1 chunks
            pl.BlockSpec((b, nc, K), lambda i: (0, i, 0)),   # x2 chunks
        ],
        out_specs=pl.BlockSpec((1, 1), lambda i: (0, 0)),
        scratch_shapes=[pltpu.VMEM((b, 1), jnp.float32) for _ in range(5)],
    )

    itemsize = jnp.dtype(x1_c.dtype).itemsize
    cost = pl.CostEstimate(
        flops=4 * b * n_pad * K,                 # two (B*nc,K)@(K,K) matmuls per element
        transcendentals=2 * b,                   # rsqrt in finalize
        bytes_accessed=2 * b * n_pad * itemsize + K * K * 4 + 4,
    )

    out = pl.pallas_call(
        kernel,
        out_shape=jax.ShapeDtypeStruct((1, 1), jnp.float32),
        grid_spec=grid_spec,
        compiler_params=pltpu.CompilerParams(
            dimension_semantics=("arbitrary",),   # sequential reduction (carry chain)
            vmem_limit_bytes=32 * 1024 * 1024,
        ),
        cost_estimate=cost,
    )(tri, x1_c, x2_c)
    return out[0, 0]


def _reference_loss(x1, x2):
    # Pure-JAX reference mirroring the torch semantics.
    b = x1.shape[0]
    a = x1.reshape(b, -1)
    c = x2.reshape(b, -1)
    ca = jnp.cumsum(a, axis=-1)
    cb = jnp.cumsum(c, axis=-1)
    eps = 1e-8
    num = jnp.sum(ca * cb, axis=-1)
    den = (jnp.maximum(jnp.linalg.norm(ca, axis=-1), eps) *
           jnp.maximum(jnp.linalg.norm(cb, axis=-1), eps))
    return jnp.mean(jnp.abs(num / den))


if __name__ == "__main__":
    key = jax.random.PRNGKey(0)
    k1, k2, k3, k4 = jax.random.split(key, 4)

    # batch=2, channels=4, spatial=16 -> flattened length N = 4*16*16 = 1024
    x1 = jax.random.normal(k1, (2, 4, 16, 16), dtype=jnp.float32)
    x2 = jax.random.normal(k2, (2, 4, 16, 16), dtype=jnp.float32)
    loss = cos_flattened_loss(x1, x2)
    jax.block_until_ready(loss)
    ref = _reference_loss(x1, x2)
    assert jnp.allclose(loss, ref, rtol=1e-4, atol=1e-4), (loss, ref)

    # A shape whose flattened length (400) is not a multiple of 128 exercises the
    # zero-pad + mask path.
    y1 = jax.random.normal(k3, (2, 4, 10, 10), dtype=jnp.float32)
    y2 = jax.random.normal(k4, (2, 4, 10, 10), dtype=jnp.float32)
    loss2 = cos_flattened_loss(y1, y2)
    jax.block_until_ready(loss2)
    ref2 = _reference_loss(y1, y2)
    assert jnp.allclose(loss2, ref2, rtol=1e-4, atol=1e-4), (loss2, ref2)

    print("KERNEL_OK")
</pallas_src>

<mosaic_0001>
module attributes {stable_mosaic.version = 11 : i64} {
  func.func @kernel(%arg0: i32, %arg1: memref<128x128xf32, #tpu.memory_space<vmem>>, %arg2: memref<2x8x128xf32, #tpu.memory_space<vmem>>, %arg3: memref<2x8x128xf32, #tpu.memory_space<vmem>>, %arg4: memref<1x1xf32, #tpu.memory_space<vmem>>, %arg5: memref<2x1xf32, #tpu.memory_space<vmem>>, %arg6: memref<2x1xf32, #tpu.memory_space<vmem>>, %arg7: memref<2x1xf32, #tpu.memory_space<vmem>>, %arg8: memref<2x1xf32, #tpu.memory_space<vmem>>, %arg9: memref<2x1xf32, #tpu.memory_space<vmem>>) attributes {dimension_semantics = [#tpu.dimension_semantics<arbitrary>], iteration_bounds = array<i64: 1>, scalar_prefetch = 0 : i64, scratch_operands = 5 : i64, tpu.core_type = #tpu.core_type<tc>, window_params = [{pipeline_mode = #tpu.pipeline_mode<synchronous>, transform_indices = @transform_0, window_bounds = array<i64: 128, 128>}, {transform_indices = @transform_1, window_bounds = array<i64: 2, 8, 128>}, {transform_indices = @transform_2, window_bounds = array<i64: 2, 8, 128>}, {pipeline_mode = #tpu.pipeline_mode<synchronous>, transform_indices = @transform_3, window_bounds = array<i64: 1, 1>}]} {
    %c0_i32 = arith.constant 0 : i32
    %0 = arith.cmpi eq, %arg0, %c0_i32 : i32
    %1 = arith.extui %0 : i1 to i32
    %c0_i32_0 = arith.constant 0 : i32
    %2 = arith.cmpi ne, %1, %c0_i32_0 : i32
    scf.if %2 {
      %cst_47 = arith.constant 0.000000e+00 : f32
      %77 = vector.broadcast %cst_47 : f32 to vector<2x1xf32>
      %c0_48 = arith.constant 0 : index
      %c0_49 = arith.constant 0 : index
      %78 = vector.load %arg5[%c0_48, %c0_49] : memref<2x1xf32, #tpu.memory_space<vmem>>, vector<2x1xf32>
      tpu.vector_store %arg5[%c0_48, %c0_49], %77 {strides = array<i32>} : memref<2x1xf32, #tpu.memory_space<vmem>>, vector<2x1xf32>,
      %cst_50 = arith.constant 0.000000e+00 : f32
      %79 = vector.broadcast %cst_50 : f32 to vector<2x1xf32>
      %c0_51 = arith.constant 0 : index
      %c0_52 = arith.constant 0 : index
      %80 = vector.load %arg6[%c0_51, %c0_52] : memref<2x1xf32, #tpu.memory_space<vmem>>, vector<2x1xf32>
      tpu.vector_store %arg6[%c0_51, %c0_52], %79 {strides = array<i32>} : memref<2x1xf32, #tpu.memory_space<vmem>>, vector<2x1xf32>,
      %cst_53 = arith.constant 0.000000e+00 : f32
      %81 = vector.broadcast %cst_53 : f32 to vector<2x1xf32>
      %c0_54 = arith.constant 0 : index
      %c0_55 = arith.constant 0 : index
      %82 = vector.load %arg7[%c0_54, %c0_55] : memref<2x1xf32, #tpu.memory_space<vmem>>, vector<2x1xf32>
      tpu.vector_store %arg7[%c0_54, %c0_55], %81 {strides = array<i32>} : memref<2x1xf32, #tpu.memory_space<vmem>>, vector<2x1xf32>,
      %cst_56 = arith.constant 0.000000e+00 : f32
      %83 = vector.broadcast %cst_56 : f32 to vector<2x1xf32>
      %c0_57 = arith.constant 0 : index
      %c0_58 = arith.constant 0 : index
      %84 = vector.load %arg8[%c0_57, %c0_58] : memref<2x1xf32, #tpu.memory_space<vmem>>, vector<2x1xf32>
      tpu.vector_store %arg8[%c0_57, %c0_58], %83 {strides = array<i32>} : memref<2x1xf32, #tpu.memory_space<vmem>>, vector<2x1xf32>,
      %cst_59 = arith.constant 0.000000e+00 : f32
      %85 = vector.broadcast %cst_59 : f32 to vector<2x1xf32>
      %c0_60 = arith.constant 0 : index
      %c0_61 = arith.constant 0 : index
      %86 = vector.load %arg9[%c0_60, %c0_61] : memref<2x1xf32, #tpu.memory_space<vmem>>, vector<2x1xf32>
      tpu.vector_store %arg9[%c0_60, %c0_61], %85 {strides = array<i32>} : memref<2x1xf32, #tpu.memory_space<vmem>>, vector<2x1xf32>,
    } else {
    }
    %c0 = arith.constant 0 : index
    %c0_1 = arith.constant 0 : index
    %3 = vector.load %arg1[%c0, %c0_1] : memref<128x128xf32, #tpu.memory_space<vmem>>, vector<128x128xf32>
    %c0_2 = arith.constant 0 : index
    %c0_3 = arith.constant 0 : index
    %c0_4 = arith.constant 0 : index
    %4 = vector.load %arg2[%c0_2, %c0_3, %c0_4] : memref<2x8x128xf32, #tpu.memory_space<vmem>>, vector<2x8x128xf32>
    %c0_5 = arith.constant 0 : index
    %c0_6 = arith.constant 0 : index
    %c0_7 = arith.constant 0 : index
    %5 = vector.load %arg3[%c0_5, %c0_6, %c0_7] : memref<2x8x128xf32, #tpu.memory_space<vmem>>, vector<2x8x128xf32>
    %6 = tpu.iota {dimensions = array<i32: 0>} : vector<8x8xi32>
    %7 = tpu.iota {dimensions = array<i32: 1>} : vector<8x8xi32>
    %8 = arith.cmpi slt, %7, %6 : vector<8x8xi32>
    %9 = arith.extui %8 : vector<8x8xi1> to vector<8x8xi32>
    %10 = arith.sitofp %9 : vector<8x8xi32> to vector<8x8xf32>
    %11 = vector.shape_cast %4 : vector<2x8x128xf32> to vector<16x128xf32>
    %cst = arith.constant dense<0.000000e+00> : vector<16x128xf32>
    %12 = tpu.matmul %11, %3, %cst {dimension_numbers = #tpu.dot_dimension_numbers<[1], [0], [0], [1], [0, 0, 1, 1], [], []>} : vector<16x128xf32>, vector<128x128xf32>, vector<16x128xf32> -> vector<16x128xf32>
    %13 = vector.shape_cast %12 : vector<16x128xf32> to vector<2x8x128xf32>
    %cst_8 = arith.constant dense<0.000000e+00> : vector<2x8xf32>
    %14 = vector.multi_reduction <add>, %4, %cst_8 [2] : vector<2x8x128xf32> to vector<2x8xf32>
    %15 = vector.shape_cast %10 : vector<8x8xf32> to vector<1x8x8xf32>
    %16 = vector.shape_cast %14 : vector<2x8xf32> to vector<2x1x8xf32>
    %17 = vector.broadcast %15 : vector<1x8x8xf32> to vector<2x8x8xf32>
    %18 = vector.broadcast %16 : vector<2x1x8xf32> to vector<2x8x8xf32>
    %19 = arith.mulf %17, %18 : vector<2x8x8xf32>
    %cst_9 = arith.constant dense<0.000000e+00> : vector<2x8xf32>
    %20 = vector.multi_reduction <add>, %19, %cst_9 [2] : vector<2x8x8xf32> to vector<2x8xf32>
    %c0_10 = arith.constant 0 : index
    %c0_11 = arith.constant 0 : index
    %21 = vector.load %arg8[%c0_10, %c0_11] : memref<2x1xf32, #tpu.memory_space<vmem>>, vector<2x1xf32>
    %22 = vector.broadcast %21 : vector<2x1xf32> to vector<2x8xf32>
    %23 = arith.addf %22, %20 : vector<2x8xf32>
    %24 = vector.shape_cast %23 : vector<2x8xf32> to vector<2x8x1xf32>
    %25 = vector.broadcast %24 : vector<2x8x1xf32> to vector<2x8x128xf32>
    %26 = arith.addf %13, %25 : vector<2x8x128xf32>
    %c0_12 = arith.constant 0 : index
    %c0_13 = arith.constant 0 : index
    %27 = vector.load %arg8[%c0_12, %c0_13] : memref<2x1xf32, #tpu.memory_space<vmem>>, vector<2x1xf32>
    %cst_14 = arith.constant dense<0.000000e+00> : vector<2xf32>
    %28 = vector.multi_reduction <add>, %14, %cst_14 [1] : vector<2x8xf32> to vector<2xf32>
    %29 = vector.shape_cast %28 : vector<2xf32> to vector<2x1xf32>
    %30 = arith.addf %27, %29 : vector<2x1xf32>
    %c0_15 = arith.constant 0 : index
    %c0_16 = arith.constant 0 : index
    %31 = vector.load %arg8[%c0_15, %c0_16] : memref<2x1xf32, #tpu.memory_space<vmem>>, vector<2x1xf32>
    tpu.vector_store %arg8[%c0_15, %c0_16], %30 {strides = array<i32>} : memref<2x1xf32, #tpu.memory_space<vmem>>, vector<2x1xf32>,
    %32 = vector.shape_cast %5 : vector<2x8x128xf32> to vector<16x128xf32>
    %cst_17 = arith.constant dense<0.000000e+00> : vector<16x128xf32>
    %33 = tpu.matmul %32, %3, %cst_17 {dimension_numbers = #tpu.dot_dimension_numbers<[1], [0], [0], [1], [0, 0, 1, 1], [], []>} : vector<16x128xf32>, vector<128x128xf32>, vector<16x128xf32> -> vector<16x128xf32>
    %34 = vector.shape_cast %33 : vector<16x128xf32> to vector<2x8x128xf32>
    %cst_18 = arith.constant dense<0.000000e+00> : vector<2x8xf32>
    %35 = vector.multi_reduction <add>, %5, %cst_18 [2] : vector<2x8x128xf32> to vector<2x8xf32>
    %36 = vector.shape_cast %10 : vector<8x8xf32> to vector<1x8x8xf32>
    %37 = vector.shape_cast %35 : vector<2x8xf32> to vector<2x1x8xf32>
    %38 = vector.broadcast %36 : vector<1x8x8xf32> to vector<2x8x8xf32>
    %39 = vector.broadcast %37 : vector<2x1x8xf32> to vector<2x8x8xf32>
    %40 = arith.mulf %38, %39 : vector<2x8x8xf32>
    %cst_19 = arith.constant dense<0.000000e+00> : vector<2x8xf32>
    %41 = vector.multi_reduction <add>, %40, %cst_19 [2] : vector<2x8x8xf32> to vector<2x8xf32>
    %c0_20 = arith.constant 0 : index
    %c0_21 = arith.constant 0 : index
    %42 = vector.load %arg9[%c0_20, %c0_21] : memref<2x1xf32, #tpu.memory_space<vmem>>, vector<2x1xf32>
    %43 = vector.broadcast %42 : vector<2x1xf32> to vector<2x8xf32>
    %44 = arith.addf %43, %41 : vector<2x8xf32>
    %45 = vector.shape_cast %44 : vector<2x8xf32> to vector<2x8x1xf32>
    %46 = vector.broadcast %45 : vector<2x8x1xf32> to vector<2x8x128xf32>
    %47 = arith.addf %34, %46 : vector<2x8x128xf32>
    %c0_22 = arith.constant 0 : index
    %c0_23 = arith.constant 0 : index
    %48 = vector.load %arg9[%c0_22, %c0_23] : memref<2x1xf32, #tpu.memory_space<vmem>>, vector<2x1xf32>
    %cst_24 = arith.constant dense<0.000000e+00> : vector<2xf32>
    %49 = vector.multi_reduction <add>, %35, %cst_24 [1] : vector<2x8xf32> to vector<2xf32>
    %50 = vector.shape_cast %49 : vector<2xf32> to vector<2x1xf32>
    %51 = arith.addf %48, %50 : vector<2x1xf32>
    %c0_25 = arith.constant 0 : index
    %c0_26 = arith.constant 0 : index
    %52 = vector.load %arg9[%c0_25, %c0_26] : memref<2x1xf32, #tpu.memory_space<vmem>>, vector<2x1xf32>
    tpu.vector_store %arg9[%c0_25, %c0_26], %51 {strides = array<i32>} : memref<2x1xf32, #tpu.memory_space<vmem>>, vector<2x1xf32>,
    %c0_27 = arith.constant 0 : index
    %c0_28 = arith.constant 0 : index
    %53 = vector.load %arg5[%c0_27, %c0_28] : memref<2x1xf32, #tpu.memory_space<vmem>>, vector<2x1xf32>
    %54 = arith.mulf %26, %47 : vector<2x8x128xf32>
    %cst_29 = arith.constant dense<0.000000e+00> : vector<2x8xf32>
    %55 = vector.multi_reduction <add>, %54, %cst_29 [2] : vector<2x8x128xf32> to vector<2x8xf32>
    %cst_30 = arith.constant dense<0.000000e+00> : vector<2xf32>
    %56 = vector.multi_reduction <add>, %55, %cst_30 [1] : vector<2x8xf32> to vector<2xf32>
    %57 = vector.shape_cast %56 : vector<2xf32> to vector<2x1xf32>
    %58 = arith.addf %53, %57 : vector<2x1xf32>
    %c0_31 = arith.constant 0 : index
    %c0_32 = arith.constant 0 : index
    %59 = vector.load %arg5[%c0_31, %c0_32] : memref<2x1xf32, #tpu.memory_space<vmem>>, vector<2x1xf32>
    tpu.vector_store %arg5[%c0_31, %c0_32], %58 {strides = array<i32>} : memref<2x1xf32, #tpu.memory_space<vmem>>, vector<2x1xf32>,
    %c0_33 = arith.constant 0 : index
    %c0_34 = arith.constant 0 : index
    %60 = vector.load %arg6[%c0_33, %c0_34] : memref<2x1xf32, #tpu.memory_space<vmem>>, vector<2x1xf32>
    %61 = arith.mulf %26, %26 : vector<2x8x128xf32>
    %cst_35 = arith.constant dense<0.000000e+00> : vector<2x8xf32>
    %62 = vector.multi_reduction <add>, %61, %cst_35 [2] : vector<2x8x128xf32> to vector<2x8xf32>
    %cst_36 = arith.constant dense<0.000000e+00> : vector<2xf32>
    %63 = vector.multi_reduction <add>, %62, %cst_36 [1] : vector<2x8xf32> to vector<2xf32>
    %64 = vector.shape_cast %63 : vector<2xf32> to vector<2x1xf32>
    %65 = arith.addf %60, %64 : vector<2x1xf32>
    %c0_37 = arith.constant 0 : index
    %c0_38 = arith.constant 0 : index
    %66 = vector.load %arg6[%c0_37, %c0_38] : memref<2x1xf32, #tpu.memory_space<vmem>>, vector<2x1xf32>
    tpu.vector_store %arg6[%c0_37, %c0_38], %65 {strides = array<i32>} : memref<2x1xf32, #tpu.memory_space<vmem>>, vector<2x1xf32>,
    %c0_39 = arith.constant 0 : index
    %c0_40 = arith.constant 0 : index
    %67 = vector.load %arg7[%c0_39, %c0_40] : memref<2x1xf32, #tpu.memory_space<vmem>>, vector<2x1xf32>
    %68 = arith.mulf %47, %47 : vector<2x8x128xf32>
    %cst_41 = arith.constant dense<0.000000e+00> : vector<2x8xf32>
    %69 = vector.multi_reduction <add>, %68, %cst_41 [2] : vector<2x8x128xf32> to vector<2x8xf32>
    %cst_42 = arith.constant dense<0.000000e+00> : vector<2xf32>
    %70 = vector.multi_reduction <add>, %69, %cst_42 [1] : vector<2x8xf32> to vector<2xf32>
    %71 = vector.shape_cast %70 : vector<2xf32> to vector<2x1xf32>
    %72 = arith.addf %67, %71 : vector<2x1xf32>
    %c0_43 = arith.constant 0 : index
    %c0_44 = arith.constant 0 : index
    %73 = vector.load %arg7[%c0_43, %c0_44] : memref<2x1xf32, #tpu.memory_space<vmem>>, vector<2x1xf32>
    tpu.vector_store %arg7[%c0_43, %c0_44], %72 {strides = array<i32>} : memref<2x1xf32, #tpu.memory_space<vmem>>, vector<2x1xf32>,
    %c0_i32_45 = arith.constant 0 : i32
    %74 = arith.cmpi eq, %arg0, %c0_i32_45 : i32
    %75 = arith.extui %74 : i1 to i32
    %c0_i32_46 = arith.constant 0 : i32
    %76 = arith.cmpi ne, %75, %c0_i32_46 : i32
    scf.if %76 {
      %c0_47 = arith.constant 0 : index
      %c0_48 = arith.constant 0 : index
      %77 = vector.load %arg6[%c0_47, %c0_48] : memref<2x1xf32, #tpu.memory_space<vmem>>, vector<2x1xf32>
      %cst_49 = arith.constant 1.000000e-16 : f32
      %78 = vector.broadcast %cst_49 : f32 to vector<2x1xf32>
      %79 = arith.maximumf %77, %78 : vector<2x1xf32>
      %80 = math.rsqrt %79 : vector<2x1xf32>
      %c0_50 = arith.constant 0 : index
      %c0_51 = arith.constant 0 : index
      %81 = vector.load %arg7[%c0_50, %c0_51] : memref<2x1xf32, #tpu.memory_space<vmem>>, vector<2x1xf32>
      %cst_52 = arith.constant 1.000000e-16 : f32
      %82 = vector.broadcast %cst_52 : f32 to vector<2x1xf32>
      %83 = arith.maximumf %81, %82 : vector<2x1xf32>
      %84 = math.rsqrt %83 : vector<2x1xf32>
      %c0_53 = arith.constant 0 : index
      %c0_54 = arith.constant 0 : index
      %85 = vector.load %arg5[%c0_53, %c0_54] : memref<2x1xf32, #tpu.memory_space<vmem>>, vector<2x1xf32>
      %86 = arith.mulf %85, %80 : vector<2x1xf32>
      %87 = arith.mulf %86, %84 : vector<2x1xf32>
      %88 = math.absf %87 : vector<2x1xf32>
      %89 = vector.shape_cast %88 : vector<2x1xf32> to vector<1x2x1xf32>
      %cst_55 = arith.constant dense<0.000000e+00> : vector<1xf32>
      %90 = vector.multi_reduction <add>, %89, %cst_55 [1, 2] : vector<1x2x1xf32> to vector<1xf32>
      %91 = vector.shape_cast %90 : vector<1xf32> to vector<1x1x1xf32>
      %92 = vector.extract %91[0, 0, 0] : f32 from vector<1x1x1xf32>
      %93 = vector.broadcast %92 : f32 to vector<1x1xf32>
      %cst_56 = arith.constant 2.000000e+00 : f32
      %94 = vector.broadcast %cst_56 : f32 to vector<1x1xf32>
      %95 = arith.divf %93, %94 : vector<1x1xf32>
      %c0_57 = arith.constant 0 : index
      %c0_58 = arith.constant 0 : index
      %96 = vector.load %arg4[%c0_57, %c0_58] : memref<1x1xf32, #tpu.memory_space<vmem>>, vector<1x1xf32>
      tpu.vector_store %arg4[%c0_57, %c0_58], %95 {strides = array<i32>} : memref<1x1xf32, #tpu.memory_space<vmem>>, vector<1x1xf32>,
    } else {
    }
    return
  }
  func.func @transform_0(%arg0: i32) -> (i32, i32) {
    %c0_i32 = arith.constant 0 : i32
    %c0_i32_0 = arith.constant 0 : i32
    %c0_i32_1 = arith.constant 0 : i32
    return %c0_i32, %c0_i32_0 : i32, i32
  }
  func.func @transform_1(%arg0: i32) -> (i32, i32, i32) {
    %c0_i32 = arith.constant 0 : i32
    %c0_i32_0 = arith.constant 0 : i32
    %c0_i32_1 = arith.constant 0 : i32
    return %c0_i32, %arg0, %c0_i32_0 : i32, i32, i32
  }
  func.func @transform_2(%arg0: i32) -> (i32, i32, i32) {
    %c0_i32 = arith.constant 0 : i32
    %c0_i32_0 = arith.constant 0 : i32
    %c0_i32_1 = arith.constant 0 : i32
    return %c0_i32, %arg0, %c0_i32_0 : i32, i32, i32
  }
  func.func @transform_3(%arg0: i32) -> (i32, i32) {
    %c0_i32 = arith.constant 0 : i32
    %c0_i32_0 = arith.constant 0 : i32
    %c0_i32_1 = arith.constant 0 : i32
    return %c0_i32, %c0_i32_0 : i32, i32
  }
}

</mosaic_0001>

<bundles_post_ra>
// kernel: cos_flattened_loss.1
= control target key start
LH: loop header
LB: loop body
LE: loop exit
PB: predicated region body
PF: predicated region fallthrough
CT: control target
= control target key end

     0   :  { %s854_s0 = inlined_call_operand.vmem [shape: f32[128,128], index: 0, kind: input, shape index: {}]   ;;  %s855_s1 = inlined_call_operand.vmem [shape: f32[2,8,128], index: 1, kind: input, shape index: {}]   ;;  %s856_s2 = inlined_call_operand.vmem [shape: f32[2,8,128], index: 2, kind: input, shape index: {}]   ;;  %s857_s3 = inlined_call_operand.hbm [shape: f32[1,1], index: 3, kind: output, shape index: {}]  }
   0x1   :  { %v43_v0 = vld [vmem:[%s856_s2] sm:$0xff] }
   0x2   :  { %v41_v1 = vld [vmem:[%s855_s1] sm:$0xff]  ;;  %290 = vadd.xlane.f32.xlu1 %v43_v0 }
   0x3   :  { %127 = vadd.xlane.f32.xlu0 %v41_v1 }
   0x4   :  { %8 = vsyncpa [#allocation8], 0  ;;  %v720_v2 = vld [vmem:[%s856_s2 + $0x8] sm:$0xff]  ;;  %551 = vmatprep.mubr.f32.mxu0 %v41_v1  ;;  %586 = vmatprep.mubr.f32.mxu1 %v43_v0  ;;  %vm19_vm0 = vcmask 1024   ;;  %v688_v4 = vmov 0.0   ;;  %v689_v5 = vmov 0   ;;  %v45_v30 = vlaneseq }
   0x5   :  { %v725_v3 = vld [vmem:[%s855_s1 + $0x8] sm:$0xff]  ;;  %23 = vst.msk [vmem:[#allocation5] sm:$0x3] %vm19_vm0, %v688_v4  ;;  %24 = vst.msk [vmem:[#allocation6] sm:$0x3] %vm19_vm0, %v688_v4  ;;  %659 = vset.pattern.permute.xlu1 %v689_v5  ;;  %658 = vset.pattern.permute.xlu0 %v689_v5  ;;  %v25_v6 = vld [vmem:[%s854_s0] sm:$0xff] }
   0x6   :  { %292 = vadd.xlane.f32.xlu1 %v720_v2  ;;  %20 = vst.msk [vmem:[#allocation2] sm:$0x3] %vm19_vm0, %v688_v4  ;;  %21 = vst.msk [vmem:[#allocation3] sm:$0x3] %vm19_vm0, %v688_v4  ;;  %v26_v7 = vld [vmem:[%s854_s0 + $0x8] sm:$0xff]  ;;  %v27_v9 = vld [vmem:[%s854_s0 + $0x10] sm:$0xff] }
   0x7   :  { %129 = vadd.xlane.f32.xlu0 %v725_v3  ;;  %22 = vst.msk [vmem:[#allocation4] sm:$0x3] %vm19_vm0, %v688_v4  ;;  %v589_v8 = vpack.c.bf16 %v26_v7, %v25_v6  ;;  %v28_v10 = vld [vmem:[%s854_s0 + $0x18] sm:$0xff]  ;;  %v29_v12 = vld [vmem:[%s854_s0 + $0x20] sm:$0xff]  ;;  %v30_v13 = vld [vmem:[%s854_s0 + $0x28] sm:$0xff]  ;;  %v46_v31 = vshrl.u32 %v45_v30, 7 }
   0x8   :  { %v593_v11 = vpack.c.bf16 %v28_v10, %v27_v9  ;;  %v597_v14 = vpack.c.bf16 %v30_v13, %v29_v12  ;;  %v31_v15 = vld [vmem:[%s854_s0 + $0x30] sm:$0xff]  ;;  %v32_v16 = vld [vmem:[%s854_s0 + $0x38] sm:$0xff]  ;;  %v33_v18 = vld [vmem:[%s854_s0 + $0x40] sm:$0xff]  ;;  %v48_v32 = vand.u32 127, %v45_v30  ;;  %vm164_vm2 = vcmask 64512  }
   0x9   :  { %590 = vmatprep.subr.bf16.mxu0 %v589_v8  ;;  %622 = vmatprep.subr.bf16.mxu1 %v589_v8  ;;  %v601_v17 = vpack.c.bf16 %v32_v16, %v31_v15  ;;  %v34_v19 = vld [vmem:[%s854_s0 + $0x48] sm:$0xff]  ;;  %v35_v21 = vld [vmem:[%s854_s0 + $0x50] sm:$0xff]  ;;  %v36_v22 = vld [vmem:[%s854_s0 + $0x58] sm:$0xff]  ;;  %vm141_vm3 = vcmask 1041409   ;;  %v192_v1 = vsub.s32 0, %v46_v31  ;;  %vm208_vm4 = vcmask 58368  }
   0xa   :  { %592 = vmatpush3.bf16.msra.mxu0 %v589_v8  ;;  %624 = vmatpush3.bf16.msra.mxu1 %v589_v8  ;;  %v605_v20 = vpack.c.bf16 %v34_v19, %v33_v18  ;;  %v609_v23 = vpack.c.bf16 %v36_v22, %v35_v21  ;;  %v37_v24 = vld [vmem:[%s854_s0 + $0x60] sm:$0xff]  ;;  %v38_v25 = vld [vmem:[%s854_s0 + $0x68] sm:$0xff]  ;;  %v39_v27 = vld [vmem:[%s854_s0 + $0x70] sm:$0xff]  ;;  %v789_v33 = vsub.s32 %v48_v32, %v46_v31  ;;  %v199_v8 = vsub.s32 1, %v46_v31 }
   0xb   :  { %594 = vmatprep.subr.bf16.mxu0 %v593_v11  ;;  %626 = vmatprep.subr.bf16.mxu1 %v593_v11  ;;  %v613_v26 = vpack.c.bf16 %v38_v25, %v37_v24  ;;  %v40_v28 = vld [vmem:[%s854_s0 + $0x78] sm:$0xff]  ;;  %vm49_vm1 = vcmp.lt.s32.totalorder %v48_v32, %v46_v31  ;;  %s690_s0 = smov [#allocation7]   ;;  %vm466_vm5 = vcmask 0  }
   0xc   :  { %v617_v29 = vpack.c.bf16 %v40_v28, %v39_v27  ;;  %v482_v36 = vsel %vm49_vm1, 1.0, %v688_v4  ;;  %v806_v53 = vld [vmem:[#allocation6] sm:$0x3]  ;;  %v808_v54 = vld [vmem:[#allocation5] sm:$0x3]  ;;  %s474_s21 = sshll.u32 %s690_s0, 4  ;;  %s475_s21 = int_to_ptr.vmem [resolvable:$true] %s474_s21 }
   0xd   :  { %s664_s23 = scalar_lea.vmem %s475_s21, 16  ;;  %s668_s24 = scalar_lea.vmem %s475_s21, 32 }
   0xe   :  { %596 = vmatpush3.bf16.msra.mxu0 %v593_v11  ;;  %628 = vmatpush3.bf16.msra.mxu1 %v593_v11  ;;  %p665_p0 = scmp.ne.s32.totalorder %s475_s21, %s664_s23  ;;  %p669_p1 = scmp.lt.s32.totalorder %s475_s21, %s475_s21 }
   0xf   :  { %598 = vmatprep.subr.bf16.mxu0 %v597_v14  ;;  %630 = vmatprep.subr.bf16.mxu1 %v597_v14  ;;  %p670_p2 = scmp.lt.s32.totalorder %s668_s24, %s664_s23 }
  0x11   :  { %p671_p3 = por %p670_p2, %p669_p1 }
  0x12   :  { %600 = vmatpush3.bf16.msra.mxu0 %v597_v14  ;;  %632 = vmatpush3.bf16.msra.mxu1 %v597_v14 }
  0x13   :  { %602 = vmatprep.subr.bf16.mxu0 %v601_v17  ;;  %634 = vmatprep.subr.bf16.mxu1 %v601_v17  ;;  %p672_p4 = pnand %p671_p3, %p665_p0 }
  0x16   :  { %604 = vmatpush3.bf16.msra.mxu0 %v601_v17  ;;  %636 = vmatpush3.bf16.msra.mxu1 %v601_v17 }
  0x17   :  { %606 = vmatprep.subr.bf16.mxu0 %v605_v20  ;;  %638 = vmatprep.subr.bf16.mxu1 %v605_v20 }
  0x1a   :  { %608 = vmatpush3.bf16.msra.mxu0 %v605_v20  ;;  %640 = vmatpush3.bf16.msra.mxu1 %v605_v20 }
  0x1b   :  { %610 = vmatprep.subr.bf16.mxu0 %v609_v23  ;;  %642 = vmatprep.subr.bf16.mxu1 %v609_v23 }
  0x1e   :  { %612 = vmatpush3.bf16.msra.mxu0 %v609_v23  ;;  %644 = vmatpush3.bf16.msra.mxu1 %v609_v23 }
  0x1f   :  { %614 = vmatprep.subr.bf16.mxu0 %v613_v26  ;;  %646 = vmatprep.subr.bf16.mxu1 %v613_v26 }
  0x22   :  { %616 = vmatpush3.bf16.msra.mxu0 %v613_v26  ;;  %648 = vmatpush3.bf16.msra.mxu1 %v613_v26 }
  0x23   :  { %618 = vmatprep.subr.bf16.mxu0 %v617_v29  ;;  %650 = vmatprep.subr.bf16.mxu1 %v617_v29 }
  0x26   :  { %620 = vmatpush3.bf16.msra.mxu0 %v617_v29  ;;  %652 = vmatpush3.bf16.msra.mxu1 %v617_v29 }
  0x29   :  { %552 = vmatmul.mubr.f32.vlgmr.msra.gmra.mrb[0].mxu0 %v725_v3  ;;  %587 = vmatmul.mubr.f32.vlgmr.msra.gmra.mrb[0].mxu1 %v720_v2 }
  0x8f   :  { %v291_v34 = vpop.xlane.xlu1 %290 }
  0x90   :  { %v128_v35 = vpop.xlane.xlu0 %127  ;;  %v299_v37 = vrot.slane %v291_v34, %v789_v33 }
  0x91   :  { %v136_v38 = vrot.slane %v128_v35, %v789_v33 }
  0x92   :  { %v318_v40 = vmul.f32 %v482_v36, %v299_v37 }
  0x93   :  { %v162_v39 = vmul.f32 %v482_v36, %v136_v38  ;;  %v293_v41 = vpop.xlane.xlu1 %292 }
  0x94   :  { %v130_v42 = vpop.xlane.xlu0 %129  ;;  %v303_v43 = vrot.slane %v293_v41, %v789_v33  ;;  %v320_v46 = vsel %vm164_vm2, %v318_v40, 0.0 }
  0x95   :  { %v140_v44 = vrot.slane %v130_v42, %v789_v33  ;;  %v165_v45 = vsel %vm164_vm2, %v162_v39, 0.0 }
  0x96   :  { %166 = vadd.xlane.f32.xlu0 %v165_v45  ;;  %v319_v48 = vmul.f32 %v482_v36, %v303_v43  ;;  %v802_v50 = vsel %vm141_vm3, %v303_v43, %v299_v37 }
  0x97   :  { %v163_v47 = vmul.f32 %v482_v36, %v140_v44  ;;  %v799_v49 = vsel %vm141_vm3, %v140_v44, %v136_v38 }
  0x98   :  { %v323_v52 = vsel %vm164_vm2, %v319_v48, 0.0  ;;  %v209_v48 = vsel %vm208_vm4, %v799_v49, 0.0 }
  0x99   :  { %v168_v51 = vsel %vm164_vm2, %v163_v47, 0.0 }
  0x9a   :  { %169 = vadd.xlane.f32.xlu1 %v168_v51  ;;  %321 = vadd.xlane.f32.xlu0 %v320_v46  ;;  %v392_v51 = vld [vmem:[#allocation3] sm:$0x3] }
  0x9e   :  { %324 = vadd.xlane.f32.xlu1 %v323_v52 }
  0xaf   :  { %329 = vperm.xlu1 %659, %v806_v53  }
  0xb0   :  { %174 = vperm.xlu0 %658, %v808_v54  }
  0xfc   :  { %v553_v56 = vpop.f32.mrb[0].mxu0  ;;  %v588_v61 = vpop.f32.mrb[0].mxu1 }
  0xfd   :  { %v118_v57 = vpop.f32.mrb[1].mxu0  ;;  %v281_v63 = vpop.f32.mrb[1].mxu1 }
 0x123   :  { %v167_v55 = vpop.xlane.xlu0 %166 }
 0x124   :  { %v182_v0 = vrot.slane %v167_v55, %v789_v33 }
 0x127   :  { %v170_v58 = vpop.xlane.xlu1 %169  ;;  %v322_v60 = vpop.xlane.xlu0 %321 }
 0x128   :  { %v186_v59 = vrot.slane %v170_v58, %v789_v33  ;;  %v337_v6 = vrot.slane %v322_v60, %v789_v33 }
 0x12a   :  { %v187_v3 = vsel %vm141_vm3, %v186_v59, %v182_v0  ;;  %v368_v59 = vld [vmem:[#allocation2] sm:$0x3] }
 0x12b   :  { %v325_v62 = vpop.xlane.xlu1 %324 }
 0x12c   :  { %v341_v2 = vrot.slane %v325_v62, %v789_v33 }
 0x12e   :  { %v342_v9 = vsel %vm141_vm3, %v341_v2, %v337_v6 }
 0x12f   :  { %v175_v4 = vpop.permute.xlu0 %174  ;;  %v330_v10 = vpop.permute.xlu1 %329 }
 0x130   :  { %v189_v5 = vadd.f32 %v187_v3, %v175_v4  ;;  %v344_v11 = vadd.f32 %v342_v9, %v330_v10  ;;  %v363_v9 = vsel %vm208_vm4, %v802_v50, 0.0 }
 0x132   :  { %v193_v7 = vrot.slane %v189_v5, %v192_v1  ;;  %v200_v12 = vrot.slane %v189_v5, %v199_v8  ;;  %v348_v13 = vrot.slane %v344_v11, %v192_v1  ;;  %v355_v14 = vrot.slane %v344_v11, %v199_v8 }
 0x134   :  { %195 = vbcast.lane.b32.xlu1 %v193_v7, 256 }
 0x138   :  { %202 = vbcast.lane.b32.xlu1 %v200_v12, 256 }
 0x13c   :  { %350 = vbcast.lane.b32.xlu1 %v348_v13, 256 }
 0x140   :  { %357 = vbcast.lane.b32.xlu1 %v355_v14, 256 }
 0x1a6   :  { %v196_v15 = vpop.permute.xlu1 %195 }
 0x1a7   :  { %v204_v16 = vadd.f32 %v196_v15, %v118_v57 }
 0x1a9   :  { %v393_v17 = vmul.f32 %v204_v16, %v204_v16 }
 0x1aa   :  { %v203_v18 = vpop.permute.xlu1 %202 }
 0x1ab   :  { %v205_v19 = vadd.f32 %v553_v56, %v203_v18  ;;  %395 = vadd.xlane.f32.xlu1 %v393_v17  ;;  %v416_v56 = vld [vmem:[#allocation4] sm:$0x3] }
 0x1ad   :  { %v394_v20 = vmul.f32 %v205_v19, %v205_v19 }
 0x1ae   :  { %v351_v21 = vpop.permute.xlu1 %350 }
 0x1af   :  { %v359_v22 = vadd.f32 %v351_v21, %v281_v63  ;;  %397 = vadd.xlane.f32.xlu0 %v394_v20 }
 0x1b1   :  { %v417_v23 = vmul.f32 %v359_v22, %v359_v22  ;;  %v369_v24 = vmul.f32 %v359_v22, %v204_v16 }
 0x1b2   :  { %v358_v25 = vpop.permute.xlu1 %357 }
 0x1b3   :  { %v360_v26 = vadd.f32 %v588_v61, %v358_v25  ;;  %419 = vadd.xlane.f32.xlu1 %v417_v23  ;;  %371 = vadd.xlane.f32.xlu0 %v369_v24 }
 0x1b5   :  { %v418_v27 = vmul.f32 %v360_v26, %v360_v26  ;;  %v370_v28 = vmul.f32 %v360_v26, %v205_v19 }
 0x1b7   :  { %421 = vadd.xlane.f32.xlu1 %v418_v27 }
 0x1bb   :  { %373 = vadd.xlane.f32.xlu1 %v370_v28 }
 0x238   :  { %v396_v29 = vpop.xlane.xlu1 %395 }
 0x239   :  { %v404_v31 = vrot.slane %v396_v29, %v789_v33 }
 0x23c   :  { %v398_v30 = vpop.xlane.xlu0 %397 }
 0x23d   :  { %v408_v32 = vrot.slane %v398_v30, %v789_v33 }
 0x23f   :  { %v409_v34 = vsel %vm141_vm3, %v408_v32, %v404_v31 }
 0x240   :  { %v420_v35 = vpop.xlane.xlu1 %419  ;;  %v411_v36 = vsel %vm208_vm4, %v409_v34, 0.0  ;;  %v372_v40 = vpop.xlane.xlu0 %371 }
 0x241   :  { %412 = vadd.xlane.f32.xlu0 %v411_v36  ;;  %v428_v38 = vrot.slane %v420_v35, %v789_v33  ;;  %v380_v44 = vrot.slane %v372_v40, %v789_v33 }
 0x244   :  { %v422_v37 = vpop.xlane.xlu1 %421 }
 0x245   :  { %v432_v39 = vrot.slane %v422_v37, %v789_v33 }
 0x247   :  { %v433_v41 = vsel %vm141_vm3, %v432_v39, %v428_v38 }
 0x248   :  { %v374_v42 = vpop.xlane.xlu1 %373  ;;  %v435_v43 = vsel %vm208_vm4, %v433_v41, 0.0 }
 0x249   :  { %v384_v45 = vrot.slane %v374_v42, %v789_v33  ;;  %436 = vadd.xlane.f32.xlu1 %v435_v43 }
 0x24b   :  { %v385_v46 = vsel %vm141_vm3, %v384_v45, %v380_v44 }
 0x24c   :  { %v387_v47 = vsel %vm208_vm4, %v385_v46, 0.0 }
 0x24d   :  { %388 = vadd.xlane.f32.xlu0 %v387_v47 }
 0x251   :  { %210 = vadd.xlane.f32.xlu0 %v209_v48 }
 0x2ce   :  { %v413_v52 = vpop.xlane.xlu0 %412 }
 0x2cf   :  { %v414_v55 = vadd.f32 %v413_v52, %v392_v51 }
 0x2d1   :  { %415 = vst.msk [vmem:[#allocation3] sm:$0x3] %vm19_vm0, %v414_v55 }
 0x2d6   :  { %v437_v57 = vpop.xlane.xlu1 %436 }
 0x2d7   :  { %v438_v58 = vadd.f32 %v437_v57, %v416_v56 }
 0x2d8   :  { %v443_v33 = vld [vmem:[#allocation3] sm:$0x3] }
 0x2d9   :  { %439 = vst.msk [vmem:[#allocation4] sm:$0x3] %vm19_vm0, %v438_v58  ;;  %v444_v62 = vmax.f32 %v443_v33, 1e-16 }
 0x2da   :  { %v389_v60 = vpop.xlane.xlu0 %388 }
 0x2db   :  { %v390_v61 = vadd.f32 %v389_v60, %v368_v59  ;;  %660 = vrsqrt.f32 %v444_v62 }
 0x2dd   :  { %391 = vst.msk [vmem:[#allocation2] sm:$0x3] %vm19_vm0, %v390_v61 }
 0x2de   :  { %v211_v63 = vpop.xlane.xlu0 %210 }
 0x2df   :  { %v212_v49 = vadd.f32 %v211_v63, %v808_v54 }
 0x2e0   :  { %v446_v0 = vld [vmem:[#allocation4] sm:$0x3] }
 0x2e1   :  { %214 = vst.msk [vmem:[#allocation5] sm:$0x3] %vm19_vm0, %v212_v49  ;;  %v447_v1 = vmax.f32 %v446_v0, 1e-16 }
 0x2e3   :  { %662 = vrsqrt.f32 %v447_v1 }
 0x2e4   :  { %v449_v3 = vld [vmem:[#allocation2] sm:$0x3] }
 0x2e5   :  { %v661_v2 = vpop.eup %660 }
 0x2e6   :  { %v450_v4 = vmul.f32 %v661_v2, %v449_v3 }
 0x2ed   :  { %v663_v5 = vpop.eup %662 }
 0x2ee   :  { %v451_v6 = vmul.f32 %v663_v5, %v450_v4 }
 0x2f0   :  { %v452_v7 = vand.u32 2147483647, %v451_v6 }
 0x2f2   :  { %v453_v8 = vsel %vm19_vm0, %v452_v7, 0.0 }
 0x2f3   :  { %454 = vadd.xlane.f32.xlu1 %v453_v8 }
 0x2f7   :  { %364 = vadd.xlane.f32.xlu1 %v363_v9 }
 0x380   :  { %v455_v54 = vpop.xlane.xlu1 %454 }
 0x381   :  { %v456_v10 = vrot.slane %v455_v54, 4 }
 0x383   :  { %v457_v11 = vadd.f32 %v456_v10, %v455_v54 }
 0x384   :  { %v365_v12 = vpop.xlane.xlu1 %364 }
 0x385   :  { %v458_v13 = vrot.slane %v457_v11, 2  ;;  %v366_v14 = vadd.f32 %v365_v12, %v806_v53 }
 0x387   :  { %367 = vst.msk [vmem:[#allocation6] sm:$0x3] %vm19_vm0, %v366_v14  ;;  %v459_v15 = vadd.f32 %v458_v13, %v457_v11 }
 0x389   :  { %v460_v16 = vrot.slane %v459_v15, 1 }
 0x38b   :  { %v461_v17 = vadd.f32 %v460_v16, %v459_v15 }
 0x38d   :  { %653 = vpush %v461_v17 }
 0x3be   :  { %s654_s22 = spop %653 }
 0x3bf   :  { %v463_v18 = vstv %s654_s22 }
 0x3c0   :  { %v465_v50 = vmul.f32 0.5, %v463_v18 }
 0x3c2   :  { %467 = vst.msk [vmem:[#allocation7] sm:$0x1] %vm466_vm5, %v465_v50 }
 0x3c3   :  { %675 = shalt.err (!%p672_p4)
}
 0x3c4   :  { %s676_s27 = scalar_lea.hbm %s857_s3, 16 }
 0x3c5   :  { %p677_p5 = scmp.ne.s32.totalorder %s857_s3, %s676_s27  ;;  %p680_p6 = scmp.lt.u32.totalorder %s676_s27, %s857_s3 }
 0x3c7   :  { %p682_p7 = pnand %p680_p6, %p677_p5 }
 0x3c9   :  { %685 = shalt.err (!%p682_p7)
}
 0x3ca   :  { %477 = dma.vmem_to_hbm [thread:$0]  %s475_s21, 16, %s857_s3, [#allocation8]  }
 0x3cb   :  { %686 = dma.done.wait [#allocation8], 16  }
 0x3cc   :  { %687 = vsyncadd [#allocation8], 4294967280 }
 0x3cd   :  { %481 = vsyncpa [#allocation8], 1 }

</bundles_post_ra>
